<compile_context>
chip_gen: v6e
topology: v6e:2x2x1
jax: 0.10.0
libtpu: 0.0.40
codegen_flags: <defaults>
</compile_context>

<pallas_src>
import functools

import jax
import jax.numpy as jnp
from jax import lax
from jax.experimental import pallas as pl
from jax.experimental.pallas import tpu as pltpu

_EPS = 1e-12            # torch.nn.functional.normalize default eps
_EPS_SQ = _EPS * _EPS   # clamp applied to the squared norm


# ----------------------------- small helpers -------------------------------


def _cdiv(a, b):
    return -(-a // b)


def _round_up(x, m):
    return _cdiv(x, m) * m


@functools.lru_cache(maxsize=None)
def _tpu_vmem_capacity_bytes():
    """Physical per-core VMEM, with a safe fallback if the query is unavailable."""
    try:
        info = pltpu.get_tpu_info()
        cap = int(getattr(info, "vmem_capacity_bytes", 0) or 0)
        if cap > 0:
            return cap
    except Exception:  # query not supported in this environment
        pass
    return 128 * 1024 * 1024


@functools.lru_cache(maxsize=None)
def _vmem_limit_bytes():
    """Generation-aware scoped-VMEM limit: ~96 MiB on v5e/v6e, ~48 MiB on v7x."""
    cap = _tpu_vmem_capacity_bytes()
    return int(min(cap * 3 // 4, 100 * 1024 * 1024))


def _pick_edge_tile(n_edges, d, dtype, max_edges_per_tile=None):
    """Bytes-based tile sizing (lane-padding aware), keeping >= 2 grid steps."""
    item = jnp.dtype(dtype).itemsize
    sub = max(8, 32 // item)                 # sublane multiple: f32->8, bf16->16, int8->32
    d_pad = _round_up(max(d, 1), 128)        # last dim pads to 128 lanes in VMEM
    # Per edge row of VMEM across the pipeline: (2 inputs * d_pad + 1 output * 128)
    # lanes, double buffered.  The output buffer is lane-padded too.
    per_row = 2 * (2 * d_pad + 128) * item
    budget = _vmem_limit_bytes() // 2        # leave half the scoped limit as headroom
    cap = max(sub, (budget // per_row) // sub * sub)
    # Keep the grid at >= 2 steps so both v7x TensorCores get work (harmless on
    # the single-core v5e/v6e).
    half = _round_up(_cdiv(max(n_edges, 1), 2), sub)
    te = max(sub, min(cap, half))
    if max_edges_per_tile:
        te = max(sub, min(te, (max_edges_per_tile // sub) * sub))
    return int(te)


# ------------------------------- kernel -------------------------------------


def _edge_cosine_kernel(u_ref, v_ref, o_ref):
    # u_ref, v_ref: [te, D] raw (un-normalized) endpoint features for this tile.
    # cos = <u, v> / (max(||u||, eps) * max(||v||, eps)), all math in f32
    # regardless of storage dtype (no bf16 normalized intermediates anywhere).
    u = u_ref[...].astype(jnp.float32)
    v = v_ref[...].astype(jnp.float32)
    dot = jnp.sum(u * v, axis=-1, keepdims=True)
    nu = jnp.sum(u * u, axis=-1, keepdims=True)
    nv = jnp.sum(v * v, axis=-1, keepdims=True)
    # rsqrt(max(||x||^2, eps^2)) == 1 / max(||x||, eps); rsqrt rides the EUP slot.
    inv = lax.rsqrt(jnp.maximum(nu, _EPS_SQ)) * lax.rsqrt(jnp.maximum(nv, _EPS_SQ))
    o_ref[...] = (dot * inv).astype(o_ref.dtype)


# ------------------------------- wrappers ------------------------------------


@functools.partial(jax.jit, static_argnames=("te",))
def _edge_cosine(h_src, h_dst, src_ids, dst_ids, *, te):
    """Gather raw endpoint rows (XLA) + fused normalize/dot (Pallas)."""
    e = src_ids.shape[0]
    pad = (-e) % te
    if pad:
        # Pad the cheap id vectors (4 B/edge), never the gathered [E, D] features.
        # Index 0 is always valid, so padded rows gather real data and are trimmed.
        src_ids = jnp.pad(src_ids, (0, pad))
        dst_ids = jnp.pad(dst_ids, (0, pad))
    u = jnp.take(h_src, src_ids, axis=0)
    v = jnp.take(h_dst, dst_ids, axis=0)
    e_pad, d = u.shape
    n_tiles = e_pad // te

    out = pl.pallas_call(
        _edge_cosine_kernel,
        out_shape=jax.ShapeDtypeStruct((e_pad, 1), h_src.dtype),
        grid=(n_tiles,),
        in_specs=[
            pl.BlockSpec((te, d), lambda i: (i, 0)),
            pl.BlockSpec((te, d), lambda i: (i, 0)),
        ],
        out_specs=pl.BlockSpec((te, 1), lambda i: (i, 0)),
        compiler_params=pltpu.CompilerParams(
            dimension_semantics=("parallel",),
            vmem_limit_bytes=_vmem_limit_bytes(),
        ),
    )(u, v)
    return out[:e]


def cosine_prediction(graph, h, *, edge_tile=None):
    """JAX/Pallas equivalent of CosinePrediction.forward.

    graph: dict canonical_etype (srctype, rel, dsttype) -> (src_ids [E], dst_ids [E])
    h:     dict node_type -> features [N_type, D]
    returns dict canonical_etype -> cosine scores [E, 1] (dtype follows h)
    """
    ratings = {}
    for etype, (src_ids, dst_ids) in graph.items():
        srctype, _, dsttype = etype
        h_src, h_dst = h[srctype], h[dsttype]
        assert h_src.shape[1] == h_dst.shape[1], "u_dot_v needs matching feature dims"
        te = _pick_edge_tile(
            int(src_ids.shape[0]), int(h_src.shape[1]), h_src.dtype,
            max_edges_per_tile=edge_tile,
        )
        ratings[etype] = _edge_cosine(
            h_src, h_dst,
            jnp.asarray(src_ids, jnp.int32), jnp.asarray(dst_ids, jnp.int32),
            te=te,
        )
    return ratings


# ----------------------------- reference & test -----------------------------


def _reference(graph, h):
    out = {}
    for etype, (src_ids, dst_ids) in graph.items():
        srctype, _, dsttype = etype
        hu = h[srctype].astype(jnp.float32)
        hv = h[dsttype].astype(jnp.float32)
        hu = hu / jnp.maximum(jnp.linalg.norm(hu, axis=-1, keepdims=True), _EPS)
        hv = hv / jnp.maximum(jnp.linalg.norm(hv, axis=-1, keepdims=True), _EPS)
        out[etype] = jnp.sum(hu[src_ids] * hv[dst_ids], axis=-1, keepdims=True)
    return out


if __name__ == "__main__":
    key = jax.random.PRNGKey(0)
    D = 32
    n_user, n_item, n_edges = 48, 64, 200  # deliberately not tile multiples

    ks = jax.random.split(key, 8)
    h = {
        "user": jax.random.normal(ks[0], (n_user, D), dtype=jnp.float32),
        "item": jax.random.normal(ks[1], (n_item, D), dtype=jnp.float32),
    }
    graph = {
        ("user", "rates", "item"): (
            jax.random.randint(ks[2], (n_edges,), 0, n_user),
            jax.random.randint(ks[3], (n_edges,), 0, n_item),
        ),
        ("item", "rated-by", "user"): (
            jax.random.randint(ks[4], (n_edges,), 0, n_item),
            jax.random.randint(ks[5], (n_edges,), 0, n_user),
        ),
    }

    ref = _reference(graph, h)

    # Default path (bytes-sized tiles, >= 2 grid steps).
    out = cosine_prediction(graph, h)
    jax.block_until_ready(out)
    for et in graph:
        assert out[et].shape == (n_edges, 1)
        assert jnp.allclose(out[et], ref[et], atol=1e-5, rtol=1e-5)

    # Small-tile path: forces a multi-step grid + id padding and output trimming.
    out_small = cosine_prediction(graph, h, edge_tile=32)
    jax.block_until_ready(out_small)
    for et in graph:
        assert jnp.allclose(out_small[et], ref[et], atol=1e-5, rtol=1e-5)

    # bf16 storage: normalization is fused and done in f32 on the raw values,
    # so the only rounding is the final cast of the cosine to bf16.
    h_bf16 = {k: v.astype(jnp.bfloat16) for k, v in h.items()}
    ref_bf16 = _reference(graph, h_bf16)
    out_bf16 = cosine_prediction(graph, h_bf16)
    jax.block_until_ready(out_bf16)
    for et in graph:
        assert jnp.allclose(out_bf16[et].astype(jnp.float32), ref_bf16[et],
                            atol=2e-2, rtol=2e-2)

    # Feature dim that is not a multiple of 128 (exercises the lane-padded path).
    D2, n_doc, n_links = 96, 40, 75
    h2 = {"doc": jax.random.normal(ks[6], (n_doc, D2), dtype=jnp.float32)}
    graph2 = {
        ("doc", "links", "doc"): (
            jax.random.randint(ks[7], (n_links,), 0, n_doc),
            jax.random.randint(jax.random.fold_in(key, 99), (n_links,), 0, n_doc),
        )
    }
    ref2 = _reference(graph2, h2)
    out2 = cosine_prediction(graph2, h2)
    jax.block_until_ready(out2)
    et2 = ("doc", "links", "doc")
    assert out2[et2].shape == (n_links, 1)
    assert jnp.allclose(out2[et2], ref2[et2], atol=1e-5, rtol=1e-5)

    print("KERNEL_OK")
</pallas_src>

<mosaic_0001>
module attributes {stable_mosaic.version = 11 : i64} {
  func.func @_edge_cosine_kernel(%arg0: i32, %arg1: memref<104x32xf32, #tpu.memory_space<vmem>>, %arg2: memref<104x32xf32, #tpu.memory_space<vmem>>, %arg3: memref<104x1xf32, #tpu.memory_space<vmem>>) attributes {dimension_semantics = [#tpu.dimension_semantics<parallel>], iteration_bounds = array<i64: 2>, scalar_prefetch = 0 : i64, scratch_operands = 0 : i64, tpu.core_type = #tpu.core_type<tc>, window_params = [{transform_indices = @transform_0, window_bounds = array<i64: 104, 32>}, {transform_indices = @transform_1, window_bounds = array<i64: 104, 32>}, {transform_indices = @transform_2, window_bounds = array<i64: 104, 1>}]} {
    %c0 = arith.constant 0 : index
    %c0_0 = arith.constant 0 : index
    %0 = vector.load %arg1[%c0, %c0_0] : memref<104x32xf32, #tpu.memory_space<vmem>>, vector<104x32xf32>
    %c0_1 = arith.constant 0 : index
    %c0_2 = arith.constant 0 : index
    %1 = vector.load %arg2[%c0_1, %c0_2] : memref<104x32xf32, #tpu.memory_space<vmem>>, vector<104x32xf32>
    %2 = arith.mulf %0, %1 : vector<104x32xf32>
    %cst = arith.constant dense<0.000000e+00> : vector<104xf32>
    %3 = vector.multi_reduction <add>, %2, %cst [1] : vector<104x32xf32> to vector<104xf32>
    %4 = vector.shape_cast %3 : vector<104xf32> to vector<104x1xf32>
    %5 = arith.mulf %0, %0 : vector<104x32xf32>
    %cst_3 = arith.constant dense<0.000000e+00> : vector<104xf32>
    %6 = vector.multi_reduction <add>, %5, %cst_3 [1] : vector<104x32xf32> to vector<104xf32>
    %7 = vector.shape_cast %6 : vector<104xf32> to vector<104x1xf32>
    %8 = arith.mulf %1, %1 : vector<104x32xf32>
    %cst_4 = arith.constant dense<0.000000e+00> : vector<104xf32>
    %9 = vector.multi_reduction <add>, %8, %cst_4 [1] : vector<104x32xf32> to vector<104xf32>
    %10 = vector.shape_cast %9 : vector<104xf32> to vector<104x1xf32>
    %cst_5 = arith.constant 1.000000e-24 : f32
    %11 = vector.broadcast %cst_5 : f32 to vector<104x1xf32>
    %12 = arith.maximumf %7, %11 : vector<104x1xf32>
    %13 = math.rsqrt %12 : vector<104x1xf32>
    %cst_6 = arith.constant 1.000000e-24 : f32
    %14 = vector.broadcast %cst_6 : f32 to vector<104x1xf32>
    %15 = arith.maximumf %10, %14 : vector<104x1xf32>
    %16 = math.rsqrt %15 : vector<104x1xf32>
    %17 = arith.mulf %13, %16 : vector<104x1xf32>
    %18 = arith.mulf %4, %17 : vector<104x1xf32>
    %c0_7 = arith.constant 0 : index
    %c0_8 = arith.constant 0 : index
    %19 = vector.load %arg3[%c0_7, %c0_8] : memref<104x1xf32, #tpu.memory_space<vmem>>, vector<104x1xf32>
    tpu.vector_store %arg3[%c0_7, %c0_8], %18 {strides = array<i32>} : memref<104x1xf32, #tpu.memory_space<vmem>>, vector<104x1xf32>,
    return
  }
  func.func @transform_0(%arg0: i32) -> (i32, i32) {
    %c0_i32 = arith.constant 0 : i32
    %c0_i32_0 = arith.constant 0 : i32
    return %arg0, %c0_i32 : i32, i32
  }
  func.func @transform_1(%arg0: i32) -> (i32, i32) {
    %c0_i32 = arith.constant 0 : i32
    %c0_i32_0 = arith.constant 0 : i32
    return %arg0, %c0_i32 : i32, i32
  }
  func.func @transform_2(%arg0: i32) -> (i32, i32) {
    %c0_i32 = arith.constant 0 : i32
    %c0_i32_0 = arith.constant 0 : i32
    return %arg0, %c0_i32 : i32, i32
  }
}

</mosaic_0001>

<bundles_post_ra>
// kernel: _edge_cosine.1
= control target key start
LH: loop header
LB: loop body
LE: loop exit
PB: predicated region body
PF: predicated region fallthrough
CT: control target
= control target key end

     0   :  { %s605_s9 = smov 0   ;;  %s807_s0 = inlined_call_operand.vmem [shape: f32[208,32], index: 0, kind: input, shape index: {}]   ;;  %s808_s1 = inlined_call_operand.vmem [shape: f32[208,32], index: 1, kind: input, shape index: {}]   ;;  %s809_s2 = inlined_call_operand.vmem [shape: f32[208,1], index: 2, kind: output, shape index: {}]  }
   0x1 LB: > { %s512_s10 = sadd.s32 4294967295, %s588_s9   ;;  %p516_p0 = scmp.ge.s32.totalorder %s588_s9, 1  ;;  %s588_s9 = sphi %s605_s9, %s12_s9  }
   0x2   : > { %p124_p1 = scmp.lt.s32.totalorder %s588_s9, 3 }
   0x4   : > { %p125_p2 = pnand %p516_p0, %p124_p1 }
   0x5   : > { %s151_s11 = smul.u32 (!%p125_p2), 13, %s512_s10 }
   0x6   : > { %128 = sbr.rel (%p125_p2) target bundleno = 236 (0xec), region = 28 }
   0x7   : > { %p152_p3 = scmp.lt.s32.totalorder (!%p125_p2), %s151_s11, 25 }
   0xb   : > { %s811_s11 = smov (!%p152_p3, %s151_s11), 25  ;;  %vm208_vm0 = vcmask 261120   ;;  %vm430_vm1 = vcmask 7168  }
   0xc   : > { %s613_s12 = sshll.u32 %s811_s11, 3 }
   0xd   : > { %s619_s15 = scalar_lea.vmem %s807_s0, %s613_s12  ;;  %s689_s18 = scalar_lea.vmem %s808_s1, %s613_s12 }
   0xe   : > { %v622_v0 = vld [vmem:[%s619_s15 + $0x10] sm:$0xff]  ;;  %v625_v1 = vld [vmem:[%s619_s15] sm:$0xff]  ;;  %v628_v2 = vld [vmem:[%s619_s15 + $0x18] sm:$0xff]  ;;  %s774_s21 = scalar_lea.vmem %s809_s2, %s613_s12 }
   0xf   : > { %v250_v3 = vmul.f32 %v622_v0, %v622_v0  ;;  %v248_v4 = vmul.f32 %v625_v1, %v625_v1  ;;  %v251_v5 = vmul.f32 %v628_v2, %v628_v2  ;;  %v637_v6 = vld [vmem:[%s619_s15 + $0x8] sm:$0xff]  ;;  %v645_v9 = vld [vmem:[%s619_s15 + $0x20] sm:$0xff]  ;;  %v656_v16 = vld [vmem:[%s619_s15 + $0x38] sm:$0xff] }
  0x10   : > { %v249_v7 = vmul.f32 %v637_v6, %v637_v6  ;;  %v642_v8 = vld [vmem:[%s619_s15 + $0x28] sm:$0xff]  ;;  %v252_v15 = vmul.f32 %v645_v9, %v645_v9  ;;  %v659_v17 = vld [vmem:[%s619_s15 + $0x30] sm:$0xff]  ;;  %v255_v20 = vmul.f32 %v656_v16, %v656_v16  ;;  %v671_v23 = vld [vmem:[%s619_s15 + $0x40] sm:$0xff] }
  0x11   : > { %v267_v10 = vsel %vm208_vm0, %v250_v3, 0.0  ;;  %v261_v11 = vsel %vm208_vm0, %v248_v4, 0.0  ;;  %v270_v12 = vsel %vm208_vm0, %v251_v5, 0.0  ;;  %v253_v14 = vmul.f32 %v642_v8, %v642_v8  ;;  %v668_v22 = vld [vmem:[%s619_s15 + $0x48] sm:$0xff]  ;;  %v680_v28 = vld [vmem:[%s619_s15 + $0x58] sm:$0xff]  ;;  %v683_v29 = vld [vmem:[%s619_s15 + $0x50] sm:$0xff] }
  0x12   : > { %268 = vadd.xlane.f32.xlu1 %v267_v10  ;;  %262 = vadd.xlane.f32.xlu0 %v261_v11  ;;  %v264_v13 = vsel %vm208_vm0, %v249_v7, 0.0  ;;  %v273_v19 = vsel %vm208_vm0, %v252_v15, 0.0  ;;  %v254_v21 = vmul.f32 %v659_v17, %v659_v17  ;;  %v282_v24 = vsel %vm208_vm0, %v255_v20, 0.0  ;;  %v182_v34 = vld [vmem:[%s689_s18] sm:$0xff]  ;;  %v184_v40 = vld [vmem:[%s689_s18 + $0x10] sm:$0xff]  ;;  %v183_v41 = vld [vmem:[%s689_s18 + $0x8] sm:$0xff] }
  0x13   : > { %v276_v18 = vsel %vm208_vm0, %v253_v14, 0.0  ;;  %v257_v26 = vmul.f32 %v668_v22, %v668_v22  ;;  %v256_v27 = vmul.f32 %v671_v23, %v671_v23  ;;  %v259_v32 = vmul.f32 %v680_v28, %v680_v28  ;;  %v699_v35 = vld [vmem:[%s619_s15 + $0x60] sm:$0xff]  ;;  %v185_v47 = vld [vmem:[%s689_s18 + $0x18] sm:$0xff]  ;;  %v188_v52 = vld [vmem:[%s689_s18 + $0x30] sm:$0xff] }
  0x14   : > { %v279_v25 = vsel %vm208_vm0, %v254_v21, 0.0  ;;  %v258_v33 = vmul.f32 %v683_v29, %v683_v29  ;;  %v300_v38 = vmul.f32 %v182_v34, %v182_v34  ;;  %v260_v39 = vmul.f32 %v699_v35, %v699_v35  ;;  %v186_v46 = vld [vmem:[%s689_s18 + $0x20] sm:$0xff]  ;;  %v187_v53 = vld [vmem:[%s689_s18 + $0x28] sm:$0xff]  ;;  %v189_v59 = vld [vmem:[%s689_s18 + $0x38] sm:$0xff] }
  0x15   : > { %v288_v30 = vsel %vm208_vm0, %v257_v26, 0.0  ;;  %v285_v31 = vsel %vm208_vm0, %v256_v27, 0.0  ;;  %v294_v36 = vsel %vm208_vm0, %v259_v32, 0.0  ;;  %v302_v44 = vmul.f32 %v184_v40, %v184_v40  ;;  %v190_v58 = vld [vmem:[%s689_s18 + $0x40] sm:$0xff]  ;;  %v192_v3 = vld [vmem:[%s689_s18 + $0x50] sm:$0xff]  ;;  %v191_v4 = vld [vmem:[%s689_s18 + $0x48] sm:$0xff] }
  0x16   : > { %271 = vadd.xlane.f32.xlu1 %v270_v12  ;;  %265 = vadd.xlane.f32.xlu0 %v264_v13  ;;  %v291_v37 = vsel %vm208_vm0, %v258_v33, 0.0  ;;  %v313_v42 = vsel %vm208_vm0, %v300_v38, 0.0  ;;  %v297_v43 = vsel %vm208_vm0, %v260_v39, 0.0  ;;  %v301_v45 = vmul.f32 %v183_v41, %v183_v41  ;;  %v194_v12 = vld [vmem:[%s689_s18 + $0x60] sm:$0xff]  ;;  %v193_v13 = vld [vmem:[%s689_s18 + $0x58] sm:$0xff] }
  0x17   : > { %v319_v48 = vsel %vm208_vm0, %v302_v44, 0.0  ;;  %v304_v50 = vmul.f32 %v186_v46, %v186_v46  ;;  %v303_v51 = vmul.f32 %v185_v47, %v185_v47  ;;  %v306_v56 = vmul.f32 %v188_v52, %v188_v52 }
  0x18   : > { %v316_v49 = vsel %vm208_vm0, %v301_v45, 0.0  ;;  %v305_v57 = vmul.f32 %v187_v53, %v187_v53  ;;  %v308_v62 = vmul.f32 %v190_v58, %v190_v58  ;;  %v307_v63 = vmul.f32 %v189_v59, %v189_v59 }
  0x19   : > { %v325_v54 = vsel %vm208_vm0, %v304_v50, 0.0  ;;  %v322_v55 = vsel %vm208_vm0, %v303_v51, 0.0  ;;  %v331_v60 = vsel %vm208_vm0, %v306_v56, 0.0  ;;  %v310_v10 = vmul.f32 %v192_v3, %v192_v3 }
  0x1a   : > { %277 = vadd.xlane.f32.xlu1 %v276_v18  ;;  %274 = vadd.xlane.f32.xlu0 %v273_v19  ;;  %v328_v61 = vsel %vm208_vm0, %v305_v57, 0.0  ;;  %v337_v5 = vsel %vm208_vm0, %v308_v62, 0.0  ;;  %v334_v7 = vsel %vm208_vm0, %v307_v63, 0.0  ;;  %v309_v11 = vmul.f32 %v191_v4, %v191_v4 }
  0x1b   : > { %v343_v14 = vsel %vm208_vm0, %v310_v10, 0.0  ;;  %v312_v18 = vmul.f32 %v194_v12, %v194_v12  ;;  %v311_v19 = vmul.f32 %v193_v13, %v193_v13 }
  0x1c   : > { %v340_v15 = vsel %vm208_vm0, %v309_v11, 0.0 }
  0x1d   : > { %v349_v20 = vsel %vm208_vm0, %v312_v18, 0.0  ;;  %v346_v21 = vsel %vm208_vm0, %v311_v19, 0.0 }
  0x1e   : > { %283 = vadd.xlane.f32.xlu1 %v282_v24  ;;  %280 = vadd.xlane.f32.xlu0 %v279_v25  ;;  %v196_v24 = vmul.f32 %v183_v41, %v637_v6  ;;  %v195_v25 = vmul.f32 %v182_v34, %v625_v1  ;;  %v200_v6 = vmul.f32 %v187_v53, %v642_v8 }
  0x1f   : > { %v199_v1 = vmul.f32 %v186_v46, %v645_v9  ;;  %v204_v8 = vmul.f32 %v191_v4, %v668_v22  ;;  %v203_v9 = vmul.f32 %v190_v58, %v671_v23  ;;  %v207_v22 = vmul.f32 %v194_v12, %v699_v35 }
  0x20   : > { %v212_v26 = vsel %vm208_vm0, %v196_v24, 0.0  ;;  %v209_v27 = vsel %vm208_vm0, %v195_v25, 0.0  ;;  %v224_v34 = vsel %vm208_vm0, %v200_v6, 0.0 }
  0x21   : > { %v236_v39 = vsel %vm208_vm0, %v204_v8, 0.0  ;;  %v245_v23 = vsel %vm208_vm0, %v207_v22, 0.0 }
  0x22   : > { %289 = vadd.xlane.f32.xlu1 %v288_v30  ;;  %286 = vadd.xlane.f32.xlu0 %v285_v31  ;;  %v198_v30 = vmul.f32 %v185_v47, %v628_v2  ;;  %v197_v31 = vmul.f32 %v184_v40, %v622_v0  ;;  %v202_v2 = vmul.f32 %v189_v59, %v656_v16  ;;  %v233_v40 = vsel %vm208_vm0, %v203_v9, 0.0 }
  0x23   : > { %v201_v0 = vmul.f32 %v188_v52, %v659_v17  ;;  %v206_v16 = vmul.f32 %v193_v13, %v680_v28  ;;  %v205_v17 = vmul.f32 %v192_v3, %v683_v29 }
  0x24   : > { %v218_v32 = vsel %vm208_vm0, %v198_v30, 0.0  ;;  %v215_v33 = vsel %vm208_vm0, %v197_v31, 0.0 }
  0x25   : > { %v227_v38 = vsel %vm208_vm0, %v201_v0, 0.0  ;;  %v242_v41 = vsel %vm208_vm0, %v206_v16, 0.0 }
  0x26   : > { %295 = vadd.xlane.f32.xlu1 %v294_v36  ;;  %292 = vadd.xlane.f32.xlu0 %v291_v37  ;;  %v221_v36 = vsel %vm208_vm0, %v199_v1, 0.0  ;;  %v230_v37 = vsel %vm208_vm0, %v202_v2, 0.0 }
  0x2a   : > { %314 = vadd.xlane.f32.xlu1 %v313_v42  ;;  %298 = vadd.xlane.f32.xlu0 %v297_v43  ;;  %v239_v42 = vsel %vm208_vm0, %v205_v17, 0.0 }
  0x2e   : > { %320 = vadd.xlane.f32.xlu1 %v319_v48  ;;  %317 = vadd.xlane.f32.xlu0 %v316_v49 }
  0x32   : > { %326 = vadd.xlane.f32.xlu1 %v325_v54  ;;  %323 = vadd.xlane.f32.xlu0 %v322_v55 }
  0x36   : > { %332 = vadd.xlane.f32.xlu1 %v331_v60  ;;  %329 = vadd.xlane.f32.xlu0 %v328_v61 }
  0x3a   : > { %338 = vadd.xlane.f32.xlu1 %v337_v5  ;;  %335 = vadd.xlane.f32.xlu0 %v334_v7 }
  0x3e   : > { %344 = vadd.xlane.f32.xlu1 %v343_v14  ;;  %341 = vadd.xlane.f32.xlu0 %v340_v15 }
  0x42   : > { %350 = vadd.xlane.f32.xlu1 %v349_v20  ;;  %347 = vadd.xlane.f32.xlu0 %v346_v21 }
  0x46   : > { %213 = vadd.xlane.f32.xlu1 %v212_v26  ;;  %210 = vadd.xlane.f32.xlu0 %v209_v27 }
  0x4a   : > { %219 = vadd.xlane.f32.xlu1 %v218_v32  ;;  %216 = vadd.xlane.f32.xlu0 %v215_v33 }
  0x4e   : > { %225 = vadd.xlane.f32.xlu1 %v224_v34  ;;  %222 = vadd.xlane.f32.xlu0 %v221_v36 }
  0x52   : > { %231 = vadd.xlane.f32.xlu1 %v230_v37  ;;  %228 = vadd.xlane.f32.xlu0 %v227_v38 }
  0x56   : > { %237 = vadd.xlane.f32.xlu1 %v236_v39  ;;  %234 = vadd.xlane.f32.xlu0 %v233_v40 }
  0x5a   : > { %243 = vadd.xlane.f32.xlu1 %v242_v41  ;;  %240 = vadd.xlane.f32.xlu0 %v239_v42 }
  0x5e   : > { %246 = vadd.xlane.f32.xlu0 %v245_v23 }
  0x9b   : > { %v269_v43 = vpop.xlane.xlu1 %268  ;;  %v263_v44 = vpop.xlane.xlu0 %262 }
  0x9c   : > { %v352_v58 = vmax.f32 %v263_v44, 1e-24  ;;  %v354_v3 = vmax.f32 %v269_v43, 1e-24 }
  0x9f   : > { %v272_v45 = vpop.xlane.xlu1 %271  ;;  %v266_v46 = vpop.xlane.xlu0 %265 }
  0xa0   : > { %v353_v61 = vmax.f32 %v266_v46, 1e-24  ;;  %v355_v7 = vmax.f32 %v272_v45, 1e-24 }
  0xa3   : > { %v278_v28 = vpop.xlane.xlu1 %277  ;;  %v275_v47 = vpop.xlane.xlu0 %274 }
  0xa4   : > { %v357_v12 = vmax.f32 %v278_v28, 1e-24  ;;  %v356_v15 = vmax.f32 %v275_v47, 1e-24 }
  0xa7   : > { %v284_v29 = vpop.xlane.xlu1 %283  ;;  %v281_v48 = vpop.xlane.xlu0 %280 }
  0xa8   : > { %v359_v20 = vmax.f32 %v284_v29, 1e-24  ;;  %v358_v25 = vmax.f32 %v281_v48, 1e-24 }
  0xab   : > { %v757_v49 = vpop.xlane.xlu1 %289  ;;  %v759_v50 = vpop.xlane.xlu0 %286 }
  0xac   : > { %v361_v32 = vmax.f32 %v757_v49, 1e-24  ;;  %v360_v34 = vmax.f32 %v759_v50, 1e-24 }
  0xaf   : > { %v761_v51 = vpop.xlane.xlu1 %295  ;;  %v763_v35 = vpop.xlane.xlu0 %292 }
  0xb0   : > { %v363_v39 = vmax.f32 %v761_v51, 1e-24  ;;  %v362_v41 = vmax.f32 %v763_v35, 1e-24 }
  0xb3   : > { %v315_v52 = vpop.xlane.xlu1 %314  ;;  %v765_v53 = vpop.xlane.xlu0 %298 }
  0xb4   : > { %v378_v56 = vmax.f32 %v315_v52, 1e-24  ;;  %v364_v49 = vmax.f32 %v765_v53, 1e-24 }
  0xb6   : > { %530 = vrsqrt.f32 %v378_v56 }
  0xb7   : > { %v321_v54 = vpop.xlane.xlu1 %320  ;;  %v318_v55 = vpop.xlane.xlu0 %317 }
  0xb8   : > { %v379_v57 = vmax.f32 %v318_v55, 1e-24  ;;  %v380_v62 = vmax.f32 %v321_v54, 1e-24 }
  0xba   : > { %532 = vrsqrt.f32 %v379_v57 }
  0xbb   : > { %v327_v59 = vpop.xlane.xlu1 %326  ;;  %v324_v60 = vpop.xlane.xlu0 %323  ;;  %534 = vrsqrt.f32 %v352_v58 }
  0xbc   : > { %v381_v63 = vmax.f32 %v324_v60, 1e-24  ;;  %536 = vrsqrt.f32 %v353_v61  ;;  %v382_v10 = vmax.f32 %v327_v59, 1e-24 }
  0xbd   : > { %538 = vrsqrt.f32 %v380_v62 }
  0xbe   : > { %540 = vrsqrt.f32 %v381_v63 }
  0xbf   : > { %v333_v4 = vpop.xlane.xlu1 %332  ;;  %v330_v5 = vpop.xlane.xlu0 %329  ;;  %542 = vrsqrt.f32 %v354_v3 }
  0xc0   : > { %v383_v11 = vmax.f32 %v330_v5, 1e-24  ;;  %544 = vrsqrt.f32 %v355_v7  ;;  %v384_v18 = vmax.f32 %v333_v4, 1e-24 }
  0xc1   : > { %546 = vrsqrt.f32 %v382_v10 }
  0xc2   : > { %548 = vrsqrt.f32 %v383_v11 }
  0xc3   : > { %v339_v13 = vpop.xlane.xlu1 %338  ;;  %v336_v14 = vpop.xlane.xlu0 %335  ;;  %550 = vrsqrt.f32 %v357_v12 }
  0xc4   : > { %v385_v19 = vmax.f32 %v336_v14, 1e-24  ;;  %552 = vrsqrt.f32 %v356_v15  ;;  %v386_v26 = vmax.f32 %v339_v13, 1e-24  ;;  %v531_v27 = vpop.eup %530 }
  0xc5   : > { %554 = vrsqrt.f32 %v384_v18 }
  0xc6   : > { %556 = vrsqrt.f32 %v385_v19 }
  0xc7   : > { %v345_v21 = vpop.xlane.xlu1 %344  ;;  %v342_v24 = vpop.xlane.xlu0 %341  ;;  %558 = vrsqrt.f32 %v359_v20 }
  0xc8   : > { %v387_v30 = vmax.f32 %v342_v24, 1e-24  ;;  %v533_v31 = vpop.eup %532  ;;  %560 = vrsqrt.f32 %v358_v25  ;;  %v388_v2 = vmax.f32 %v345_v21, 1e-24 }
  0xc9   : > { %v535_v1 = vpop.eup %534  ;;  %562 = vrsqrt.f32 %v386_v26 }
  0xca   : > { %v537_v36 = vpop.eup %536  ;;  %564 = vrsqrt.f32 %v387_v30  ;;  %v404_v8 = vmul.f32 %v535_v1, %v531_v27 }
  0xcb   : > { %v351_v33 = vpop.xlane.xlu1 %350  ;;  %v348_v6 = vpop.xlane.xlu0 %347  ;;  %v405_v38 = vmul.f32 %v537_v36, %v533_v31  ;;  %566 = vrsqrt.f32 %v361_v32 }
  0xcc   : > { %v539_v0 = vpop.eup %538  ;;  %v389_v37 = vmax.f32 %v348_v6, 1e-24  ;;  %568 = vrsqrt.f32 %v360_v34  ;;  %v390_v44 = vmax.f32 %v351_v33, 1e-24 }
  0xcd   : > { %v541_v9 = vpop.eup %540  ;;  %570 = vrsqrt.f32 %v388_v2 }
  0xce   : > { %v543_v17 = vpop.eup %542  ;;  %572 = vrsqrt.f32 %v389_v37 }
  0xcf   : > { %v214_v40 = vpop.xlane.xlu1 %213  ;;  %v211_v16 = vpop.xlane.xlu0 %210  ;;  %v406_v46 = vmul.f32 %v543_v17, %v539_v0  ;;  %574 = vrsqrt.f32 %v363_v39 }
  0xd0   : > { %v418_v42 = vmul.f32 %v405_v38, %v214_v40  ;;  %v417_v22 = vmul.f32 %v404_v8, %v211_v16  ;;  %v545_v23 = vpop.eup %544  ;;  %576 = vrsqrt.f32 %v362_v41 }
  0xd1   : > { %v547_v43 = vpop.eup %546  ;;  %v407_v45 = vmul.f32 %v545_v23, %v541_v9  ;;  %578 = vrsqrt.f32 %v390_v44 }
  0xd2   : > { %432 = vst.msk [vmem:[%s774_s21 + $0x8] sm:$0xff] %vm430_vm1, %v418_v42  ;;  %431 = vst.msk [vmem:[%s774_s21] sm:$0xff] %vm430_vm1, %v417_v22  ;;  %v549_v28 = vpop.eup %548  ;;  %580 = vrsqrt.f32 %v364_v49 }
  0xd3   : > { %v220_v47 = vpop.xlane.xlu1 %219  ;;  %v217_v29 = vpop.xlane.xlu0 %216 }
  0xd4   : > { %v551_v48 = vpop.eup %550  ;;  %v420_v50 = vmul.f32 %v407_v45, %v220_v47  ;;  %v419_v51 = vmul.f32 %v406_v46, %v217_v29 }
  0xd5   : > { %v553_v35 = vpop.eup %552  ;;  %v409_v54 = vmul.f32 %v551_v48, %v549_v28 }
  0xd6   : > { %v555_v52 = vpop.eup %554  ;;  %434 = vst.msk [vmem:[%s774_s21 + $0x18] sm:$0xff] %vm430_vm1, %v420_v50  ;;  %433 = vst.msk [vmem:[%s774_s21 + $0x10] sm:$0xff] %vm430_vm1, %v419_v51  ;;  %v408_v55 = vmul.f32 %v553_v35, %v547_v43 }
  0xd7   : > { %v557_v56 = vpop.eup %556  ;;  %v226_v57 = vpop.xlane.xlu1 %225 }
  0xd8   : > { %v223_v58 = vpop.xlane.xlu0 %222  ;;  %v559_v59 = vpop.eup %558  ;;  %v422_v60 = vmul.f32 %v409_v54, %v226_v57 }
  0xd9   : > { %v421_v53 = vmul.f32 %v408_v55, %v223_v58  ;;  %v561_v61 = vpop.eup %560  ;;  %v411_v63 = vmul.f32 %v559_v59, %v557_v56 }
  0xda   : > { %v563_v62 = vpop.eup %562  ;;  %436 = vst.msk [vmem:[%s774_s21 + $0x28] sm:$0xff] %vm430_vm1, %v422_v60  ;;  %v410_v3 = vmul.f32 %v561_v61, %v555_v52 }
  0xdb   : > { %435 = vst.msk [vmem:[%s774_s21 + $0x20] sm:$0xff] %vm430_vm1, %v421_v53  ;;  %v565_v4 = vpop.eup %564  ;;  %v232_v5 = vpop.xlane.xlu1 %231 }
  0xdc   : > { %v229_v7 = vpop.xlane.xlu0 %228  ;;  %v567_v10 = vpop.eup %566  ;;  %v424_v11 = vmul.f32 %v411_v63, %v232_v5 }
  0xdd   : > { %v423_v12 = vmul.f32 %v410_v3, %v229_v7  ;;  %v569_v13 = vpop.eup %568  ;;  %v413_v15 = vmul.f32 %v567_v10, %v565_v4 }
  0xde   : > { %v571_v14 = vpop.eup %570  ;;  %438 = vst.msk [vmem:[%s774_s21 + $0x38] sm:$0xff] %vm430_vm1, %v424_v11  ;;  %v412_v18 = vmul.f32 %v569_v13, %v563_v62 }
  0xdf   : > { %437 = vst.msk [vmem:[%s774_s21 + $0x30] sm:$0xff] %vm430_vm1, %v423_v12  ;;  %v573_v19 = vpop.eup %572  ;;  %v238_v20 = vpop.xlane.xlu1 %237 }
  0xe0   : > { %v235_v21 = vpop.xlane.xlu0 %234  ;;  %v575_v24 = vpop.eup %574  ;;  %v426_v25 = vmul.f32 %v413_v15, %v238_v20 }
  0xe1   : > { %v425_v26 = vmul.f32 %v412_v18, %v235_v21  ;;  %v577_v27 = vpop.eup %576  ;;  %v415_v30 = vmul.f32 %v575_v24, %v573_v19 }
  0xe2   : > { %440 = vst.msk [vmem:[%s774_s21 + $0x48] sm:$0xff] %vm430_vm1, %v426_v25  ;;  %v414_v31 = vmul.f32 %v577_v27, %v571_v14  ;;  %v579_v32 = vpop.eup %578 }
  0xe3   : > { %439 = vst.msk [vmem:[%s774_s21 + $0x40] sm:$0xff] %vm430_vm1, %v425_v26  ;;  %v244_v33 = vpop.xlane.xlu1 %243  ;;  %v581_v36 = vpop.eup %580 }
  0xe4   : > { %v241_v6 = vpop.xlane.xlu0 %240  ;;  %v428_v1 = vmul.f32 %v415_v30, %v244_v33  ;;  %v416_v2 = vmul.f32 %v581_v36, %v579_v32 }
  0xe5   : > { %v427_v34 = vmul.f32 %v414_v31, %v241_v6 }
  0xe6   : > { %442 = vst.msk [vmem:[%s774_s21 + $0x58] sm:$0xff] %vm430_vm1, %v428_v1 }
  0xe7   : > { %441 = vst.msk [vmem:[%s774_s21 + $0x50] sm:$0xff] %vm430_vm1, %v427_v34 }
  0xe8   : > { %v247_v0 = vpop.xlane.xlu0 %246 }
  0xe9   : > { %v429_v37 = vmul.f32 %v416_v2, %v247_v0 }
  0xeb   : > { %443 = vst.msk [vmem:[%s774_s21 + $0x60] sm:$0xff] %vm430_vm1, %v429_v37 }
  0xec PF: > { %s12_s9 = sadd.s32 1, %s588_s9  }
  0xed   : > { %p9_p4 = scmp.ge.s32.totalorder %s12_s9, 4  }
  0xef   :  { %11 = sbr.rel (!%p9_p4) target bundleno = 1 (0x1), region = 61 }

</bundles_post_ra>
